<compile_context>
chip_gen: v6e
topology: v6e:2x2x1
jax: 0.10.0
libtpu: 0.0.40
codegen_flags: <defaults>
</compile_context>

<pallas_src>
import math

import jax
import jax.numpy as jnp
import numpy as np
from jax.experimental import pallas as pl
from jax.experimental.pallas import tpu as pltpu

TRANSFORMER_DIM = 32     # transformer_dim (small synthetic)
N_NEURONS = 128          # MLP hidden width
MLP_DIM = 128            # mlp_dim
N_COORDS = 21            # coord bins per axis
POS_BOUND = 0.4
INIT_DENSITY = 0.1
OUT_DIM = 3 + 1 + 3 + 4 + 3   # xyz, opacity, scale, rot(fixed), rgb = 14

HEAD_WIDTH = 128         # fused-head lane width (one full vreg lane dim)
_L_XYZ = 0               # lanes [0, 63)   xyz logits
_L_OP = 63               # lane 63         opacity logit
_L_SC = 64               # lanes [64, 67)  scale logits
_L_RGB = 67              # lanes [67, 70)  rgb logits
_L_ONE = 70              # lane 70         constant 1.0 (carries rot-w)


def _silu(x):
    return x * jax.nn.sigmoid(x)


def _round_up(x, m):
    return ((x + m - 1) // m) * m


def gsdecoder_kernel(x_ref, w1_ref, b1_ref, w2_ref, b2_ref,
                     wh_ref, bh_ref, g_ref, gct_ref, p_ref, out_ref):
    x = x_ref[...]

    # mlp_net: SiLU(Linear2(SiLU(Linear1(x))))
    h = jnp.dot(x, w1_ref[...], preferred_element_type=jnp.float32) + b1_ref[...]
    h = _silu(h)
    f = jnp.dot(h, w2_ref[...], preferred_element_type=jnp.float32) + b2_ref[...]
    f = _silu(f)

    # Fused gs heads: one (tm,128)x(128,128) MXU pass.
    # u lanes: [xyz(63) | op(1) | scale(3) | rgb(3) | 1.0 @ lane 70 | zeros]
    u = jnp.dot(f, wh_ref[...], preferred_element_type=jnp.float32) + bh_ref[...]

    # --- xyz: per-axis L2 normalize over 21 bins, expectation over coord grid ---
    # group sum-of-squares: (tm,128) @ (128,3); rows >= 63 of G are zero.
    grp_sq = jnp.dot(u * u, g_ref[...], preferred_element_type=jnp.float32)     # (tm, 3)
    # F.normalize eps semantics: 1 / max(||v||, 1e-12), via EUP rsqrt.
    inv = jax.lax.rsqrt(jnp.maximum(grp_sq, 1e-24))                              # (tm, 3)
    # broadcast back to the 63 xyz lanes with the coord grid folded in:
    # inv_c[:, j] = coords[j % 21] / ||v_group(j)||  (zero outside lanes 0..62)
    inv_c = jnp.dot(inv, gct_ref[...], preferred_element_type=jnp.float32)       # (tm, 128)
    xyz_part = u * inv_c                                                         # (tm, 128)

    # --- opacity / scale / rgb: lane-masked activations on the fused slab ---
    lane = jax.lax.broadcasted_iota(jnp.int32, u.shape, 1)
    sig_mask = (lane == _L_OP) | ((lane >= _L_RGB) & (lane < _L_RGB + 3))
    sp_mask = (lane >= _L_SC) & (lane < _L_SC + 3)
    other = (jnp.where(sig_mask, jax.nn.sigmoid(u), 0.0)
             + jnp.where(sp_mask, 0.1 * jax.nn.softplus(u), 0.0)
             + jnp.where(lane == _L_ONE, u, 0.0))   # lane 70 carries the rot-w constant

    # --- single placement matmul: fused lanes -> 14 output lanes ---
    s = xyz_part + other                                                         # disjoint lanes
    out = jnp.dot(s, p_ref[...], preferred_element_type=jnp.float32)             # (tm, 14)
    out_ref[...] = out.astype(out_ref.dtype)


def init_params(key, transformer_dim=TRANSFORMER_DIM):
    ks = jax.random.split(key, 9)

    def default_linear(kw, kb, fan_in, fan_out):
        bound = 1.0 / math.sqrt(fan_in)
        w = jax.random.uniform(kw, (fan_in, fan_out), jnp.float32, -bound, bound)
        b = jax.random.uniform(kb, (1, fan_out), jnp.float32, -bound, bound)
        return w, b

    w1, b1 = default_linear(ks[0], ks[1], transformer_dim, N_NEURONS)
    w2, b2 = default_linear(ks[2], ks[3], N_NEURONS, MLP_DIM)

    # xyz head: xavier_uniform weight, zero bias
    xav = math.sqrt(6.0 / (MLP_DIM + 3 * N_COORDS))
    w_xyz = jax.random.uniform(ks[4], (MLP_DIM, 3 * N_COORDS), jnp.float32, -xav, xav)
    b_xyz = jnp.zeros((3 * N_COORDS,), jnp.float32)

    # opacity: default weight, bias = inverse_sigmoid(init_density)
    w_op, _ = default_linear(ks[5], ks[6], MLP_DIM, 1)
    b_op = jnp.full((1,), float(np.log(INIT_DENSITY / (1.0 - INIT_DENSITY))), jnp.float32)

    # scale: default weight, bias = -1.8
    w_sc, _ = default_linear(ks[7], ks[8], MLP_DIM, 3)
    b_sc = jnp.full((3,), -1.8, jnp.float32)

    # rgb: zero weight, zero bias
    w_rgb = jnp.zeros((MLP_DIM, 3), jnp.float32)
    b_rgb = jnp.zeros((3,), jnp.float32)

    coords_np = np.linspace(-POS_BOUND, POS_BOUND, N_COORDS).astype(np.float32)

    # ---- fused head weight/bias: [xyz(63) | op(1) | sc(3) | rgb(3) | 1@70 | 0...] ----
    W_heads = jnp.zeros((MLP_DIM, HEAD_WIDTH), jnp.float32)
    W_heads = (W_heads.at[:, _L_XYZ:_L_XYZ + 3 * N_COORDS].set(w_xyz)
                      .at[:, _L_OP:_L_OP + 1].set(w_op)
                      .at[:, _L_SC:_L_SC + 3].set(w_sc)
                      .at[:, _L_RGB:_L_RGB + 3].set(w_rgb))
    b_heads = jnp.zeros((1, HEAD_WIDTH), jnp.float32)
    b_heads = (b_heads.at[0, _L_XYZ:_L_XYZ + 3 * N_COORDS].set(b_xyz)
                      .at[0, _L_OP:_L_OP + 1].set(b_op)
                      .at[0, _L_SC:_L_SC + 3].set(b_sc)
                      .at[0, _L_RGB:_L_RGB + 3].set(b_rgb)
                      .at[0, _L_ONE].set(1.0))

    # group-membership matrix (per-axis norm) and coord-scaled transpose
    G128 = np.zeros((HEAD_WIDTH, 3), np.float32)
    GcT128 = np.zeros((3, HEAD_WIDTH), np.float32)
    for j in range(3 * N_COORDS):
        a = j // N_COORDS
        G128[j, a] = 1.0
        GcT128[a, j] = coords_np[j % N_COORDS]

    # placement matrix: fused-head lanes -> 14 output lanes
    P = np.zeros((HEAD_WIDTH, OUT_DIM), np.float32)
    for j in range(3 * N_COORDS):
        P[j, j // N_COORDS] = 1.0          # xyz group sum (coords already folded in)
    P[_L_OP, 3] = 1.0                       # opacity
    for k in range(3):
        P[_L_SC + k, 4 + k] = 1.0           # scale
        P[_L_RGB + k, 11 + k] = 1.0         # rgb
    P[_L_ONE, 7] = 1.0                      # rot = [1, 0, 0, 0]

    return dict(
        # raw parameters (used by the pure-JAX reference)
        w1=w1, b1=b1, w2=w2, b2=b2,
        w_xyz=w_xyz, b_xyz=b_xyz, w_op=w_op, b_op=b_op,
        w_sc=w_sc, b_sc=b_sc, w_rgb=w_rgb, b_rgb=b_rgb,
        coords=jnp.asarray(coords_np),
        # fused constants consumed by the kernel
        W_heads=W_heads, b_heads=b_heads,
        G128=jnp.asarray(G128), GcT128=jnp.asarray(GcT128), P=jnp.asarray(P),
    )


def gsdecoder_forward(feats, params, tm=1024):
    """Kernel wrapper.  tm is the token-row tile; M is padded up to a multiple of it."""
    B, N, D = feats.shape
    M = B * N
    # keep tiny problems tiny, but use big tiles (512-2048) for realistic M
    tm_eff = max(8, min(tm, _round_up(M, 8)))
    M_pad = _round_up(M, tm_eff)

    x = feats.reshape(M, D).astype(jnp.float32)
    if M_pad != M:
        x = jnp.pad(x, ((0, M_pad - M), (0, 0)))

    p = params
    weight_args = [p["w1"], p["b1"], p["w2"], p["b2"],
                   p["W_heads"], p["b_heads"], p["G128"], p["GcT128"], p["P"]]

    def full_spec(arr):
        return pl.BlockSpec(arr.shape, lambda i: (0, 0))

    out = pl.pallas_call(
        gsdecoder_kernel,
        out_shape=jax.ShapeDtypeStruct((M_pad, OUT_DIM), jnp.float32),
        grid_spec=pltpu.PrefetchScalarGridSpec(
            num_scalar_prefetch=0,
            grid=(M_pad // tm_eff,),
            in_specs=[pl.BlockSpec((tm_eff, D), lambda i: (i, 0))]
                     + [full_spec(a) for a in weight_args],
            out_specs=pl.BlockSpec((tm_eff, OUT_DIM), lambda i: (i, 0)),
        ),
        compiler_params=pltpu.CompilerParams(
            dimension_semantics=("parallel",)),
    )(x, *weight_args)

    return out[:M].reshape(B, N, OUT_DIM)


def ref_forward(feats, p):
    """Pure-JAX reference matching the PyTorch forward() (enable_triplane=False)."""
    B, N, _ = feats.shape
    h = _silu(feats @ p["w1"] + p["b1"][0])
    f = _silu(h @ p["w2"] + p["b2"][0])

    v = (f @ p["w_xyz"] + p["b_xyz"]).reshape(B, N, 3, N_COORDS)
    norm = jnp.sqrt(jnp.sum(v * v, axis=-1, keepdims=True))
    prob = v / jnp.maximum(norm, 1e-12)
    xyz = jnp.sum(prob * p["coords"][None, None, None, :], axis=-1)

    op = jax.nn.sigmoid(f @ p["w_op"] + p["b_op"])
    sc = 0.1 * jax.nn.softplus(f @ p["w_sc"] + p["b_sc"])
    rot = jnp.zeros((B, N, 4), jnp.float32).at[..., 0].set(1.0)
    rgb = jax.nn.sigmoid(f @ p["w_rgb"] + p["b_rgb"])
    return jnp.concatenate([xyz, op, sc, rot, rgb], axis=-1)


if __name__ == "__main__":
    key = jax.random.PRNGKey(0)
    k_feat, k_feat2, k_param = jax.random.split(key, 3)

    params = init_params(k_param)

    # main check: B=2, N=8
    B, N = 2, 8
    feats = jax.random.normal(k_feat, (B, N, TRANSFORMER_DIM), jnp.float32)
    out = jax.block_until_ready(gsdecoder_forward(feats, params))
    ref = jax.block_until_ready(ref_forward(feats, params))
    assert out.shape == (B, N, OUT_DIM), out.shape
    np.testing.assert_allclose(np.asarray(out), np.asarray(ref), rtol=2e-4, atol=2e-4)

    # remainder-tile check: M = 15 is not a multiple of the tile -> exercises padding
    B2, N2 = 3, 5
    feats2 = jax.random.normal(k_feat2, (B2, N2, TRANSFORMER_DIM), jnp.float32)
    out2 = jax.block_until_ready(gsdecoder_forward(feats2, params))
    ref2 = jax.block_until_ready(ref_forward(feats2, params))
    assert out2.shape == (B2, N2, OUT_DIM), out2.shape
    np.testing.assert_allclose(np.asarray(out2), np.asarray(ref2), rtol=2e-4, atol=2e-4)

    # TODO(synk): enable_triplane=True (mlp_tri) and partial_output overrides are not
    # implemented; default GSDecoder forward path only.
    print("KERNEL_OK")
</pallas_src>

<mosaic_0001>
module attributes {stable_mosaic.version = 11 : i64} {
  func.func @gsdecoder_kernel(%arg0: i32, %arg1: memref<16x32xf32, #tpu.memory_space<vmem>>, %arg2: memref<32x128xf32, #tpu.memory_space<vmem>>, %arg3: memref<1x128xf32, #tpu.memory_space<vmem>>, %arg4: memref<128x128xf32, #tpu.memory_space<vmem>>, %arg5: memref<1x128xf32, #tpu.memory_space<vmem>>, %arg6: memref<128x128xf32, #tpu.memory_space<vmem>>, %arg7: memref<1x128xf32, #tpu.memory_space<vmem>>, %arg8: memref<128x3xf32, #tpu.memory_space<vmem>>, %arg9: memref<3x128xf32, #tpu.memory_space<vmem>>, %arg10: memref<128x14xf32, #tpu.memory_space<vmem>>, %arg11: memref<16x14xf32, #tpu.memory_space<vmem>>) attributes {dimension_semantics = [#tpu.dimension_semantics<parallel>], iteration_bounds = array<i64: 1>, scalar_prefetch = 0 : i64, scratch_operands = 0 : i64, tpu.core_type = #tpu.core_type<tc>, window_params = [{transform_indices = @transform_0, window_bounds = array<i64: 16, 32>}, {pipeline_mode = #tpu.pipeline_mode<synchronous>, transform_indices = @transform_1, window_bounds = array<i64: 32, 128>}, {pipeline_mode = #tpu.pipeline_mode<synchronous>, transform_indices = @transform_2, window_bounds = array<i64: 1, 128>}, {pipeline_mode = #tpu.pipeline_mode<synchronous>, transform_indices = @transform_3, window_bounds = array<i64: 128, 128>}, {pipeline_mode = #tpu.pipeline_mode<synchronous>, transform_indices = @transform_4, window_bounds = array<i64: 1, 128>}, {pipeline_mode = #tpu.pipeline_mode<synchronous>, transform_indices = @transform_5, window_bounds = array<i64: 128, 128>}, {pipeline_mode = #tpu.pipeline_mode<synchronous>, transform_indices = @transform_6, window_bounds = array<i64: 1, 128>}, {pipeline_mode = #tpu.pipeline_mode<synchronous>, transform_indices = @transform_7, window_bounds = array<i64: 128, 3>}, {pipeline_mode = #tpu.pipeline_mode<synchronous>, transform_indices = @transform_8, window_bounds = array<i64: 3, 128>}, {pipeline_mode = #tpu.pipeline_mode<synchronous>, transform_indices = @transform_9, window_bounds = array<i64: 128, 14>}, {transform_indices = @transform_10, window_bounds = array<i64: 16, 14>}]} {
    %c0 = arith.constant 0 : index
    %c0_0 = arith.constant 0 : index
    %0 = vector.load %arg1[%c0, %c0_0] : memref<16x32xf32, #tpu.memory_space<vmem>>, vector<16x32xf32>
    %c0_1 = arith.constant 0 : index
    %c0_2 = arith.constant 0 : index
    %1 = vector.load %arg2[%c0_1, %c0_2] : memref<32x128xf32, #tpu.memory_space<vmem>>, vector<32x128xf32>
    %cst = arith.constant dense<0.000000e+00> : vector<16x128xf32>
    %2 = tpu.matmul %0, %1, %cst {dimension_numbers = #tpu.dot_dimension_numbers<[1], [0], [0], [1], [0, 0, 1, 1], [], []>} : vector<16x32xf32>, vector<32x128xf32>, vector<16x128xf32> -> vector<16x128xf32>
    %c0_3 = arith.constant 0 : index
    %c0_4 = arith.constant 0 : index
    %3 = vector.load %arg3[%c0_3, %c0_4] : memref<1x128xf32, #tpu.memory_space<vmem>>, vector<1x128xf32>
    %4 = vector.broadcast %3 : vector<1x128xf32> to vector<16x128xf32>
    %5 = arith.addf %2, %4 : vector<16x128xf32>
    %6 = arith.negf %5 : vector<16x128xf32>
    %7 = math.exp %6 : vector<16x128xf32>
    %cst_5 = arith.constant 1.000000e+00 : f32
    %8 = vector.broadcast %cst_5 : f32 to vector<16x128xf32>
    %9 = arith.addf %8, %7 : vector<16x128xf32>
    %10 = arith.divf %8, %9 : vector<16x128xf32>
    %11 = arith.mulf %5, %10 : vector<16x128xf32>
    %c0_6 = arith.constant 0 : index
    %c0_7 = arith.constant 0 : index
    %12 = vector.load %arg4[%c0_6, %c0_7] : memref<128x128xf32, #tpu.memory_space<vmem>>, vector<128x128xf32>
    %cst_8 = arith.constant dense<0.000000e+00> : vector<16x128xf32>
    %13 = tpu.matmul %11, %12, %cst_8 {dimension_numbers = #tpu.dot_dimension_numbers<[1], [0], [0], [1], [0, 0, 1, 1], [], []>} : vector<16x128xf32>, vector<128x128xf32>, vector<16x128xf32> -> vector<16x128xf32>
    %c0_9 = arith.constant 0 : index
    %c0_10 = arith.constant 0 : index
    %14 = vector.load %arg5[%c0_9, %c0_10] : memref<1x128xf32, #tpu.memory_space<vmem>>, vector<1x128xf32>
    %15 = vector.broadcast %14 : vector<1x128xf32> to vector<16x128xf32>
    %16 = arith.addf %13, %15 : vector<16x128xf32>
    %17 = arith.negf %16 : vector<16x128xf32>
    %18 = math.exp %17 : vector<16x128xf32>
    %cst_11 = arith.constant 1.000000e+00 : f32
    %19 = vector.broadcast %cst_11 : f32 to vector<16x128xf32>
    %20 = arith.addf %19, %18 : vector<16x128xf32>
    %21 = arith.divf %19, %20 : vector<16x128xf32>
    %22 = arith.mulf %16, %21 : vector<16x128xf32>
    %c0_12 = arith.constant 0 : index
    %c0_13 = arith.constant 0 : index
    %23 = vector.load %arg6[%c0_12, %c0_13] : memref<128x128xf32, #tpu.memory_space<vmem>>, vector<128x128xf32>
    %cst_14 = arith.constant dense<0.000000e+00> : vector<16x128xf32>
    %24 = tpu.matmul %22, %23, %cst_14 {dimension_numbers = #tpu.dot_dimension_numbers<[1], [0], [0], [1], [0, 0, 1, 1], [], []>} : vector<16x128xf32>, vector<128x128xf32>, vector<16x128xf32> -> vector<16x128xf32>
    %c0_15 = arith.constant 0 : index
    %c0_16 = arith.constant 0 : index
    %25 = vector.load %arg7[%c0_15, %c0_16] : memref<1x128xf32, #tpu.memory_space<vmem>>, vector<1x128xf32>
    %26 = vector.broadcast %25 : vector<1x128xf32> to vector<16x128xf32>
    %27 = arith.addf %24, %26 : vector<16x128xf32>
    %28 = arith.mulf %27, %27 : vector<16x128xf32>
    %c0_17 = arith.constant 0 : index
    %c0_18 = arith.constant 0 : index
    %29 = vector.load %arg8[%c0_17, %c0_18] : memref<128x3xf32, #tpu.memory_space<vmem>>, vector<128x3xf32>
    %cst_19 = arith.constant dense<0.000000e+00> : vector<16x3xf32>
    %30 = tpu.matmul %28, %29, %cst_19 {dimension_numbers = #tpu.dot_dimension_numbers<[1], [0], [0], [1], [0, 0, 1, 1], [], []>} : vector<16x128xf32>, vector<128x3xf32>, vector<16x3xf32> -> vector<16x3xf32>
    %cst_20 = arith.constant 1.000000e-24 : f32
    %31 = vector.broadcast %cst_20 : f32 to vector<16x3xf32>
    %32 = arith.maximumf %30, %31 : vector<16x3xf32>
    %33 = math.rsqrt %32 : vector<16x3xf32>
    %c0_21 = arith.constant 0 : index
    %c0_22 = arith.constant 0 : index
    %34 = vector.load %arg9[%c0_21, %c0_22] : memref<3x128xf32, #tpu.memory_space<vmem>>, vector<3x128xf32>
    %cst_23 = arith.constant dense<0.000000e+00> : vector<16x128xf32>
    %35 = tpu.matmul %33, %34, %cst_23 {dimension_numbers = #tpu.dot_dimension_numbers<[1], [0], [0], [1], [0, 0, 1, 1], [], []>} : vector<16x3xf32>, vector<3x128xf32>, vector<16x128xf32> -> vector<16x128xf32>
    %36 = arith.mulf %27, %35 : vector<16x128xf32>
    %37 = tpu.iota {dimensions = array<i32: 1>} : vector<16x128xi32>
    %c63_i32 = arith.constant 63 : i32
    %38 = vector.broadcast %c63_i32 : i32 to vector<16x128xi32>
    %39 = arith.cmpi eq, %37, %38 : vector<16x128xi32>
    %c67_i32 = arith.constant 67 : i32
    %40 = vector.broadcast %c67_i32 : i32 to vector<16x128xi32>
    %41 = arith.cmpi sge, %37, %40 : vector<16x128xi32>
    %c70_i32 = arith.constant 70 : i32
    %42 = vector.broadcast %c70_i32 : i32 to vector<16x128xi32>
    %43 = arith.cmpi slt, %37, %42 : vector<16x128xi32>
    %44 = arith.andi %41, %43 : vector<16x128xi1>
    %45 = arith.ori %39, %44 : vector<16x128xi1>
    %c64_i32 = arith.constant 64 : i32
    %46 = vector.broadcast %c64_i32 : i32 to vector<16x128xi32>
    %47 = arith.cmpi sge, %37, %46 : vector<16x128xi32>
    %c67_i32_24 = arith.constant 67 : i32
    %48 = vector.broadcast %c67_i32_24 : i32 to vector<16x128xi32>
    %49 = arith.cmpi slt, %37, %48 : vector<16x128xi32>
    %50 = arith.andi %47, %49 : vector<16x128xi1>
    %51 = arith.negf %27 : vector<16x128xf32>
    %52 = math.exp %51 : vector<16x128xf32>
    %cst_25 = arith.constant 1.000000e+00 : f32
    %53 = vector.broadcast %cst_25 : f32 to vector<16x128xf32>
    %54 = arith.addf %53, %52 : vector<16x128xf32>
    %55 = arith.divf %53, %54 : vector<16x128xf32>
    %cst_26 = arith.constant 0.000000e+00 : f32
    %56 = vector.broadcast %cst_26 : f32 to vector<16x128xf32>
    %57 = arith.select %45, %55, %56 : vector<16x128xi1>, vector<16x128xf32>
    %cst_27 = arith.constant 0.000000e+00 : f32
    %58 = vector.broadcast %cst_27 : f32 to vector<16x128xf32>
    %59 = arith.maximumf %27, %58 : vector<16x128xf32>
    %60 = vector.broadcast %cst_27 : f32 to vector<16x128xf32>
    %61 = arith.subf %27, %60 : vector<16x128xf32>
    %62 = arith.cmpf one, %61, %61 : vector<16x128xf32>
    %63 = vector.broadcast %cst_27 : f32 to vector<16x128xf32>
    %64 = arith.addf %27, %63 : vector<16x128xf32>
    %65 = math.absf %61 : vector<16x128xf32>
    %cst_28 = arith.constant 0.000000e+00 : f32
    %66 = vector.broadcast %cst_28 : f32 to vector<16x128xf32>
    %67 = arith.subf %66, %65 : vector<16x128xf32>
    %68 = math.exp %67 : vector<16x128xf32>
    %69 = math.log1p %68 : vector<16x128xf32>
    %70 = arith.addf %59, %69 : vector<16x128xf32>
    %71 = arith.select %62, %64, %70 : vector<16x128xi1>, vector<16x128xf32>
    %cst_29 = arith.constant 1.000000e-01 : f32
    %72 = vector.broadcast %cst_29 : f32 to vector<16x128xf32>
    %73 = arith.mulf %72, %71 : vector<16x128xf32>
    %cst_30 = arith.constant 0.000000e+00 : f32
    %74 = vector.broadcast %cst_30 : f32 to vector<16x128xf32>
    %75 = arith.select %50, %73, %74 : vector<16x128xi1>, vector<16x128xf32>
    %76 = arith.addf %57, %75 : vector<16x128xf32>
    %c70_i32_31 = arith.constant 70 : i32
    %77 = vector.broadcast %c70_i32_31 : i32 to vector<16x128xi32>
    %78 = arith.cmpi eq, %37, %77 : vector<16x128xi32>
    %cst_32 = arith.constant 0.000000e+00 : f32
    %79 = vector.broadcast %cst_32 : f32 to vector<16x128xf32>
    %80 = arith.select %78, %27, %79 : vector<16x128xi1>, vector<16x128xf32>
    %81 = arith.addf %76, %80 : vector<16x128xf32>
    %82 = arith.addf %36, %81 : vector<16x128xf32>
    %c0_33 = arith.constant 0 : index
    %c0_34 = arith.constant 0 : index
    %83 = vector.load %arg10[%c0_33, %c0_34] : memref<128x14xf32, #tpu.memory_space<vmem>>, vector<128x14xf32>
    %cst_35 = arith.constant dense<0.000000e+00> : vector<16x14xf32>
    %84 = tpu.matmul %82, %83, %cst_35 {dimension_numbers = #tpu.dot_dimension_numbers<[1], [0], [0], [1], [0, 0, 1, 1], [], []>} : vector<16x128xf32>, vector<128x14xf32>, vector<16x14xf32> -> vector<16x14xf32>
    %c0_36 = arith.constant 0 : index
    %c0_37 = arith.constant 0 : index
    %85 = vector.load %arg11[%c0_36, %c0_37] : memref<16x14xf32, #tpu.memory_space<vmem>>, vector<16x14xf32>
    tpu.vector_store %arg11[%c0_36, %c0_37], %84 {strides = array<i32>} : memref<16x14xf32, #tpu.memory_space<vmem>>, vector<16x14xf32>,
    return
  }
  func.func @transform_0(%arg0: i32) -> (i32, i32) {
    %c0_i32 = arith.constant 0 : i32
    %c0_i32_0 = arith.constant 0 : i32
    return %arg0, %c0_i32 : i32, i32
  }
  func.func @transform_1(%arg0: i32) -> (i32, i32) {
    %c0_i32 = arith.constant 0 : i32
    %c0_i32_0 = arith.constant 0 : i32
    %c0_i32_1 = arith.constant 0 : i32
    return %c0_i32, %c0_i32_0 : i32, i32
  }
  func.func @transform_2(%arg0: i32) -> (i32, i32) {
    %c0_i32 = arith.constant 0 : i32
    %c0_i32_0 = arith.constant 0 : i32
    %c0_i32_1 = arith.constant 0 : i32
    return %c0_i32, %c0_i32_0 : i32, i32
  }
  func.func @transform_3(%arg0: i32) -> (i32, i32) {
    %c0_i32 = arith.constant 0 : i32
    %c0_i32_0 = arith.constant 0 : i32
    %c0_i32_1 = arith.constant 0 : i32
    return %c0_i32, %c0_i32_0 : i32, i32
  }
  func.func @transform_4(%arg0: i32) -> (i32, i32) {
    %c0_i32 = arith.constant 0 : i32
    %c0_i32_0 = arith.constant 0 : i32
    %c0_i32_1 = arith.constant 0 : i32
    return %c0_i32, %c0_i32_0 : i32, i32
  }
  func.func @transform_5(%arg0: i32) -> (i32, i32) {
    %c0_i32 = arith.constant 0 : i32
    %c0_i32_0 = arith.constant 0 : i32
    %c0_i32_1 = arith.constant 0 : i32
    return %c0_i32, %c0_i32_0 : i32, i32
  }
  func.func @transform_6(%arg0: i32) -> (i32, i32) {
    %c0_i32 = arith.constant 0 : i32
    %c0_i32_0 = arith.constant 0 : i32
    %c0_i32_1 = arith.constant 0 : i32
    return %c0_i32, %c0_i32_0 : i32, i32
  }
  func.func @transform_7(%arg0: i32) -> (i32, i32) {
    %c0_i32 = arith.constant 0 : i32
    %c0_i32_0 = arith.constant 0 : i32
    %c0_i32_1 = arith.constant 0 : i32
    return %c0_i32, %c0_i32_0 : i32, i32
  }
  func.func @transform_8(%arg0: i32) -> (i32, i32) {
    %c0_i32 = arith.constant 0 : i32
    %c0_i32_0 = arith.constant 0 : i32
    %c0_i32_1 = arith.constant 0 : i32
    return %c0_i32, %c0_i32_0 : i32, i32
  }
  func.func @transform_9(%arg0: i32) -> (i32, i32) {
    %c0_i32 = arith.constant 0 : i32
    %c0_i32_0 = arith.constant 0 : i32
    %c0_i32_1 = arith.constant 0 : i32
    return %c0_i32, %c0_i32_0 : i32, i32
  }
  func.func @transform_10(%arg0: i32) -> (i32, i32) {
    %c0_i32 = arith.constant 0 : i32
    %c0_i32_0 = arith.constant 0 : i32
    return %arg0, %c0_i32 : i32, i32
  }
}

</mosaic_0001>

<bundles_post_ra>
// kernel: tpu_custom_call.1
= control target key start
LH: loop header
LB: loop body
LE: loop exit
PB: predicated region body
PF: predicated region fallthrough
CT: control target
= control target key end

     0   :  { %15 = vsyncpa [#allocation3], 0  ;;  %s1420_s0 = inlined_call_operand.hbm [shape: f32[16,32], index: 0, kind: input, shape index: {}]   ;;  %s1421_s1 = inlined_call_operand.hbm [shape: f32[32,128], index: 1, kind: input, shape index: {}]   ;;  %s1422_s2 = inlined_call_operand.vmem [shape: f32[1,128], index: 2, kind: input, shape index: {}]   ;;  %s1423_s3 = inlined_call_operand.vmem [shape: f32[128,128], index: 3, kind: input, shape index: {}]   ;;  %s1424_s4 = inlined_call_operand.vmem [shape: f32[1,128], index: 4, kind: input, shape index: {}]   ;;  %s1425_s5 = inlined_call_operand.vmem [shape: f32[128,128], index: 5, kind: input, shape index: {}]   ;;  %s1426_s6 = inlined_call_operand.vmem [shape: f32[1,128], index: 6, kind: input, shape index: {}]   ;;  %s1427_s7 = inlined_call_operand.vmem [shape: f32[128,3], index: 7, kind: input, shape index: {}]   ;;  %s1428_s8 = inlined_call_operand.vmem [shape: f32[3,128], index: 8, kind: input, shape index: {}]   ;;  %s1429_s9 = inlined_call_operand.vmem [shape: f32[128,14], index: 9, kind: input, shape index: {}]   ;;  %s1430_s10 = inlined_call_operand.hbm [shape: f32[16,14], index: 10, kind: output, shape index: {}]  }
   0x1   :  { %16 = vsyncpa [#allocation6], 0 }
   0x2   :  { %17 = vsyncpa [#allocation4], 0  ;;  %s1112_s13 = smov [#allocation2]  }
   0x3   :  { %s23_s14 = sshll.u32 %s1112_s13, 4  ;;  %s24_s14 = int_to_ptr.vmem [resolvable:$true] %s23_s14 }
   0x4   :  { %s1054_s15 = scalar_lea.vmem %s24_s14, 256  ;;  %p1059_p1 = scmp.lt.s32.totalorder %s24_s14, %s24_s14 }
   0x5   :  { %p1055_p0 = scmp.ne.s32.totalorder %s24_s14, %s1054_s15  ;;  %p1060_p2 = scmp.lt.s32.totalorder %s1054_s15, %s1054_s15 }
   0x7   :  { %p1061_p3 = por %p1060_p2, %p1059_p1 }
   0x9   :  { %p1062_p4 = pnand %p1061_p3, %p1055_p0 }
   0xb   :  { %1065 = shalt.err (!%p1062_p4)
}
   0xc   :  { %s1113_s16 = smov 128   ;;  %s1114_s17 = smov 8  }
   0xd   :  { %29 = dma.hbm_to_vmem [thread:$0]  %s1420_s0, 256, %s24_s14, [#allocation3], %s1113_s16, %s1113_s16, %s1114_s17  }
   0xe   :  { %s1115_s20 = smov [#allocation5]  }
   0xf   :  { %s35_s21 = sshll.u32 %s1115_s20, 4  ;;  %s36_s21 = int_to_ptr.vmem [resolvable:$true] %s35_s21 }
  0x10   :  { %s1074_s22 = scalar_lea.vmem %s36_s21, 512  ;;  %p1079_p6 = scmp.lt.s32.totalorder %s36_s21, %s36_s21 }
  0x11   :  { %p1075_p5 = scmp.ne.s32.totalorder %s36_s21, %s1074_s22  ;;  %p1080_p7 = scmp.lt.s32.totalorder %s1074_s22, %s1074_s22 }
  0x13   :  { %p1081_p8 = por %p1080_p7, %p1079_p6 }
  0x15   :  { %p1082_p9 = pnand %p1081_p8, %p1075_p5 }
  0x17   :  { %1085 = shalt.err (!%p1082_p9)
}
  0x18   :  { %41 = dma.hbm_to_vmem [thread:$0]  %s1421_s1, 512, %s36_s21, [#allocation6], %s1113_s16, %s1113_s16, %s1114_s17  }
  0x19   :  { %1106 = dma.done.wait [#allocation3], 256  }
  0x1a   :  { %1107 = vsyncadd [#allocation3], 4294967040 }
  0x1b   :  { %1108 = dma.done.wait [#allocation6], 512  }
  0x1c   :  { %1109 = vsyncadd [#allocation6], 4294966784  ;;  %vm77_vm0 = vcmask 261120   ;;  %v69_v0 = vld [vmem:[#allocation5 + $0x18] sm:$0xff]  ;;  %v68_v1 = vld [vmem:[#allocation5 + $0x10] sm:$0xff]  ;;  %vm488_vm1 = vcmask 1042432  }
  0x1d   :  { %849 = vmatprep.subr.mxu1 %v69_v0  ;;  %v64_v2 = vld [vmem:[#allocation2] sm:$0xff]  ;;  %v67_v3 = vld [vmem:[#allocation5 + $0x8] sm:$0xff]  ;;  %v66_v4 = vld [vmem:[#allocation5] sm:$0xff]  ;;  %vm481_vm2 = vcmask 23552  }
  0x1e   :  { %850 = vmatpush3.msra.mxu1 %v69_v0  ;;  %857 = vmatprep.mubr.msk.f32.mxu1 %vm77_vm0, %v64_v2  ;;  %v65_v5 = vld [vmem:[#allocation2 + $0x8] sm:$0xff]  ;;  %v188_v6 = vld [vmem:[%s1423_s3 + $0x78] sm:$0xff]  ;;  %v187_v7 = vld [vmem:[%s1423_s3 + $0x70] sm:$0xff] }
  0x1f   :  { %851 = vmatprep.subr.mxu1 %v68_v1  ;;  %v186_v8 = vld [vmem:[%s1423_s3 + $0x68] sm:$0xff]  ;;  %v185_v9 = vld [vmem:[%s1423_s3 + $0x60] sm:$0xff]  ;;  %v184_v10 = vld [vmem:[%s1423_s3 + $0x58] sm:$0xff] }
  0x20   :  { %852 = vmatpush3.msra.mxu1 %v68_v1  ;;  %v183_v11 = vld [vmem:[%s1423_s3 + $0x50] sm:$0xff]  ;;  %v182_v12 = vld [vmem:[%s1423_s3 + $0x48] sm:$0xff]  ;;  %v181_v13 = vld [vmem:[%s1423_s3 + $0x40] sm:$0xff] }
  0x21   :  { %853 = vmatprep.subr.mxu1 %v67_v3  ;;  %v180_v14 = vld [vmem:[%s1423_s3 + $0x38] sm:$0xff]  ;;  %v179_v15 = vld [vmem:[%s1423_s3 + $0x30] sm:$0xff]  ;;  %v178_v16 = vld [vmem:[%s1423_s3 + $0x28] sm:$0xff] }
  0x22   :  { %854 = vmatpush3.msra.mxu1 %v67_v3  ;;  %v177_v17 = vld [vmem:[%s1423_s3 + $0x20] sm:$0xff]  ;;  %v176_v18 = vld [vmem:[%s1423_s3 + $0x18] sm:$0xff]  ;;  %v175_v19 = vld [vmem:[%s1423_s3 + $0x10] sm:$0xff] }
  0x23   :  { %855 = vmatprep.subr.mxu1 %v66_v4  ;;  %v174_v20 = vld [vmem:[%s1423_s3 + $0x8] sm:$0xff]  ;;  %v173_v21 = vld [vmem:[%s1423_s3] sm:$0xff]  ;;  %v300_v37 = vld [vmem:[%s1425_s5 + $0x78] sm:$0xff] }
  0x24   :  { %856 = vmatpush3.msra.mxu1 %v66_v4  ;;  %v754_v22 = vld [vmem:[%s1422_s2] ss:$0 sm:$0xff]  ;;  %895 = vmatprep.subr.mxu0 %v300_v37  ;;  %v299_v38 = vld [vmem:[%s1425_s5 + $0x70] sm:$0xff]  ;;  %v298_v39 = vld [vmem:[%s1425_s5 + $0x68] sm:$0xff] }
  0x25   :  { %858 = vmatmul.mubr.msk.f32.vlgmr.msra.gmra.mxu1 %vm77_vm0, %v65_v5  ;;  %860 = vmatprep.subr.mxu1 %v188_v6  ;;  %v297_v40 = vld [vmem:[%s1425_s5 + $0x60] sm:$0xff]  ;;  %v296_v41 = vld [vmem:[%s1425_s5 + $0x58] sm:$0xff]  ;;  %v295_v42 = vld [vmem:[%s1425_s5 + $0x50] sm:$0xff]  ;;  %vm733_vm0 = vcmask 113664  }
  0x26   :  { %861 = vmatpush3.msra.mxu1 %v188_v6  ;;  %896 = vmatpush3.msra.mxu0 %v300_v37  ;;  %v294_v43 = vld [vmem:[%s1425_s5 + $0x48] sm:$0xff]  ;;  %v293_v44 = vld [vmem:[%s1425_s5 + $0x40] sm:$0xff]  ;;  %v292_v45 = vld [vmem:[%s1425_s5 + $0x38] sm:$0xff] }
  0x27   :  { %862 = vmatprep.subr.mxu1 %v187_v7  ;;  %897 = vmatprep.subr.mxu0 %v299_v38  ;;  %v291_v46 = vld [vmem:[%s1425_s5 + $0x30] sm:$0xff]  ;;  %v290_v47 = vld [vmem:[%s1425_s5 + $0x28] sm:$0xff]  ;;  %v289_v48 = vld [vmem:[%s1425_s5 + $0x20] sm:$0xff] }
  0x28   :  { %863 = vmatpush3.msra.mxu1 %v187_v7  ;;  %898 = vmatpush3.msra.mxu0 %v299_v38  ;;  %v288_v49 = vld [vmem:[%s1425_s5 + $0x18] sm:$0xff]  ;;  %v287_v50 = vld [vmem:[%s1425_s5 + $0x10] sm:$0xff]  ;;  %v286_v51 = vld [vmem:[%s1425_s5 + $0x8] sm:$0xff] }
  0x29   :  { %864 = vmatprep.subr.mxu1 %v186_v8  ;;  %899 = vmatprep.subr.mxu0 %v298_v39  ;;  %v285_v52 = vld [vmem:[%s1425_s5] sm:$0xff]  ;;  %v400_v53 = vld [vmem:[%s1427_s7 + $0x78] sm:$0xff]  ;;  %v399_v54 = vld [vmem:[%s1427_s7 + $0x70] sm:$0xff] }
  0x2a   :  { %865 = vmatpush3.msra.mxu1 %v186_v8  ;;  %900 = vmatpush3.msra.mxu0 %v298_v39  ;;  %v398_v55 = vld [vmem:[%s1427_s7 + $0x68] sm:$0xff]  ;;  %v397_v56 = vld [vmem:[%s1427_s7 + $0x60] sm:$0xff]  ;;  %v396_v57 = vld [vmem:[%s1427_s7 + $0x58] sm:$0xff] }
  0x2b   :  { %866 = vmatprep.subr.mxu1 %v185_v9  ;;  %901 = vmatprep.subr.mxu0 %v297_v40  ;;  %v395_v58 = vld [vmem:[%s1427_s7 + $0x50] sm:$0xff]  ;;  %v394_v59 = vld [vmem:[%s1427_s7 + $0x48] sm:$0xff]  ;;  %v393_v60 = vld [vmem:[%s1427_s7 + $0x40] sm:$0xff] }
  0x2c   :  { %867 = vmatpush3.msra.mxu1 %v185_v9  ;;  %902 = vmatpush3.msra.mxu0 %v297_v40  ;;  %v392_v61 = vld [vmem:[%s1427_s7 + $0x38] sm:$0xff]  ;;  %v391_v62 = vld [vmem:[%s1427_s7 + $0x30] sm:$0xff]  ;;  %v390_v63 = vld [vmem:[%s1427_s7 + $0x28] sm:$0xff] }
  0x2d   :  { %868 = vmatprep.subr.mxu1 %v184_v10  ;;  %903 = vmatprep.subr.mxu0 %v296_v41  ;;  %v389_v0 = vld [vmem:[%s1427_s7 + $0x20] sm:$0xff]  ;;  %v653_v38 = vld [vmem:[%s1429_s9 + $0x58] sm:$0xff]  ;;  %v652_v39 = vld [vmem:[%s1429_s9 + $0x50] sm:$0xff] }
  0x2e   :  { %869 = vmatpush3.msra.mxu1 %v184_v10  ;;  %904 = vmatpush3.msra.mxu0 %v296_v41  ;;  %v759_v1 = vld [vmem:[%s1424_s4] ss:$0 sm:$0xff]  ;;  %v651_v40 = vld [vmem:[%s1429_s9 + $0x48] sm:$0xff] }
  0x2f   :  { %870 = vmatprep.subr.mxu1 %v183_v11  ;;  %905 = vmatprep.subr.mxu0 %v295_v42  ;;  %v654_v37 = vld [vmem:[%s1429_s9 + $0x60] sm:$0xff] }
  0x30   :  { %871 = vmatpush3.msra.mxu1 %v183_v11  ;;  %906 = vmatpush3.msra.mxu0 %v295_v42  ;;  %v650_v41 = vld [vmem:[%s1429_s9 + $0x40] sm:$0xff]  ;;  %v649_v42 = vld [vmem:[%s1429_s9 + $0x38] sm:$0xff] }
  0x31   :  { %872 = vmatprep.subr.mxu1 %v182_v12  ;;  %907 = vmatprep.subr.mxu0 %v294_v43 }
  0x32   :  { %873 = vmatpush3.msra.mxu1 %v182_v12  ;;  %908 = vmatpush3.msra.mxu0 %v294_v43  ;;  %v648_v43 = vld [vmem:[%s1429_s9 + $0x30] sm:$0xff] }
  0x33   :  { %874 = vmatprep.subr.mxu1 %v181_v13  ;;  %909 = vmatprep.subr.mxu0 %v293_v44 }
  0x34   :  { %875 = vmatpush3.msra.mxu1 %v181_v13  ;;  %910 = vmatpush3.msra.mxu0 %v293_v44  ;;  %v647_v44 = vld [vmem:[%s1429_s9 + $0x28] sm:$0xff] }
  0x35   :  { %876 = vmatprep.subr.mxu1 %v180_v14  ;;  %911 = vmatprep.subr.mxu0 %v292_v45 }
  0x36   :  { %877 = vmatpush3.msra.mxu1 %v180_v14  ;;  %912 = vmatpush3.msra.mxu0 %v292_v45  ;;  %v646_v45 = vld [vmem:[%s1429_s9 + $0x20] sm:$0xff] }
  0x37   :  { %878 = vmatprep.subr.mxu1 %v179_v15  ;;  %913 = vmatprep.subr.mxu0 %v291_v46 }
  0x38   :  { %879 = vmatpush3.msra.mxu1 %v179_v15  ;;  %914 = vmatpush3.msra.mxu0 %v291_v46  ;;  %v645_v46 = vld [vmem:[%s1429_s9 + $0x18] sm:$0xff] }
  0x39   :  { %880 = vmatprep.subr.mxu1 %v178_v16  ;;  %915 = vmatprep.subr.mxu0 %v290_v47 }
  0x3a   :  { %881 = vmatpush3.msra.mxu1 %v178_v16  ;;  %916 = vmatpush3.msra.mxu0 %v290_v47  ;;  %v388_v16 = vld [vmem:[%s1427_s7 + $0x18] sm:$0xff]  ;;  %v644_v47 = vld [vmem:[%s1429_s9 + $0x10] sm:$0xff] }
  0x3b   :  { %882 = vmatprep.subr.mxu1 %v177_v17  ;;  %917 = vmatprep.subr.mxu0 %v289_v48 }
  0x3c   :  { %883 = vmatpush3.msra.mxu1 %v177_v17  ;;  %918 = vmatpush3.msra.mxu0 %v289_v48  ;;  %v387_v17 = vld [vmem:[%s1427_s7 + $0x10] sm:$0xff]  ;;  %v643_v48 = vld [vmem:[%s1429_s9 + $0x8] sm:$0xff] }
  0x3d   :  { %884 = vmatprep.subr.mxu1 %v176_v18  ;;  %919 = vmatprep.subr.mxu0 %v288_v49 }
  0x3e   :  { %885 = vmatpush3.msra.mxu1 %v176_v18  ;;  %920 = vmatpush3.msra.mxu0 %v288_v49  ;;  %v386_v18 = vld [vmem:[%s1427_s7 + $0x8] sm:$0xff]  ;;  %v642_v49 = vld [vmem:[%s1429_s9] sm:$0xff] }
  0x3f   :  { %886 = vmatprep.subr.mxu1 %v175_v19  ;;  %921 = vmatprep.subr.mxu0 %v287_v50 }
  0x40   :  { %887 = vmatpush3.msra.mxu1 %v175_v19  ;;  %922 = vmatpush3.msra.mxu0 %v287_v50  ;;  %v385_v19 = vld [vmem:[%s1427_s7] sm:$0xff] }
  0x41   :  { %888 = vmatprep.subr.mxu1 %v174_v20  ;;  %923 = vmatprep.subr.mxu0 %v286_v51 }
  0x42   :  { %889 = vmatpush3.msra.mxu1 %v174_v20  ;;  %924 = vmatpush3.msra.mxu0 %v286_v51  ;;  %v762_v20 = vld [vmem:[%s1426_s6] ss:$0 sm:$0xff] }
  0x43   :  { %890 = vmatprep.subr.mxu1 %v173_v21  ;;  %925 = vmatprep.subr.mxu0 %v285_v52 }
  0x44   :  { %891 = vmatpush3.msra.mxu1 %v173_v21  ;;  %926 = vmatpush3.msra.mxu0 %v285_v52 }
  0x45   :  { %930 = vmatprep.subr.mxu1 %v400_v53 }
  0xe5   :  { %v859_v23 = vpop.f32.mrf.mxu1 }
  0xe6   :  { %v156_v24 = vadd.f32 %v859_v23, %v754_v22 }
  0xe7   :  { %v150_v25 = vpop.f32.mrf.mxu1 }
  0xe8   :  { %v758_v26 = vmul.f32 -1.442695, %v156_v24  ;;  %v151_v27 = vadd.f32 %v754_v22, %v150_v25 }
  0xea   :  { %1010 = vpow2.f32 %v758_v26  ;;  %v757_v28 = vmul.f32 -1.442695, %v151_v27 }
  0xec   :  { %1012 = vpow2.f32 %v757_v28  ;;  %v657_v28 = vld [vmem:[%s1429_s9 + $0x78] sm:$0xff] }
  0xf7   :  { %v1011_v29 = vpop.eup %1010 }
  0xf8   :  { %v166_v30 = vadd.f32 1.0, %v1011_v29 }
  0xf9   :  { %v1013_v31 = vpop.eup %1012 }
  0xfa   :  { %v165_v32 = vadd.f32 1.0, %v1013_v31  ;;  %1014 = vrcp.f32 %v166_v30 }
  0xfc   :  { %1016 = vrcp.f32 %v165_v32 }
 0x107   :  { %v1015_v33 = vpop.eup %1014 }
 0x108   :  { %v172_v36 = vmul.f32 %v1015_v33, %v156_v24 }
 0x109   :  { %v1017_v34 = vpop.eup %1016 }
 0x10a   :  { %v171_v35 = vmul.f32 %v1017_v34, %v151_v27  ;;  %v480_v27 = vld [vmem:[%s1428_s8] sm:$0x7] }
 0x10b   :  { %965 = vmatprep.subr.msk.mxu0 %vm488_vm1, %v480_v27 }
 0x10c   :  { %892 = vmatprep.mubr.f32.mxu1 %v171_v35  ;;  %v656_v35 = vld [vmem:[%s1429_s9 + $0x70] sm:$0xff] }
 0x10d   :  { %893 = vmatmul.mubr.f32.vlgmr.msra.gmra.mxu1 %v172_v36  ;;  %v655_v36 = vld [vmem:[%s1429_s9 + $0x68] sm:$0xff]  ;;  %s1116_s9 = smov [#allocation7]  }
 0x10e   :  { %931 = vmatpush3.msra.mxu1 %v400_v53  ;;  %s741_s20 = sshll.u32 %s1116_s9, 4  ;;  %s742_s20 = int_to_ptr.vmem [resolvable:$true] %s741_s20 }
 0x10f   :  { %932 = vmatprep.subr.mxu1 %v399_v54  ;;  %s1086_s21 = scalar_lea.vmem %s742_s20, 256  ;;  %p1091_p11 = scmp.lt.s32.totalorder %s742_s20, %s742_s20 }
 0x110   :  { %933 = vmatpush3.msra.mxu1 %v399_v54  ;;  %p1087_p10 = scmp.ne.s32.totalorder %s742_s20, %s1086_s21  ;;  %p1092_p12 = scmp.lt.s32.totalorder %s1086_s21, %s1086_s21 }
 0x111   :  { %934 = vmatprep.subr.mxu1 %v398_v55 }
 0x112   :  { %935 = vmatpush3.msra.mxu1 %v398_v55  ;;  %p1093_p13 = por %p1092_p12, %p1091_p11 }
 0x113   :  { %936 = vmatprep.subr.mxu1 %v397_v56 }
 0x114   :  { %937 = vmatpush3.msra.mxu1 %v397_v56  ;;  %p1094_p0 = pnand %p1093_p13, %p1087_p10 }
 0x115   :  { %938 = vmatprep.subr.mxu1 %v396_v57 }
 0x116   :  { %939 = vmatpush3.msra.mxu1 %v396_v57 }
 0x117   :  { %940 = vmatprep.subr.mxu1 %v395_v58 }
 0x118   :  { %941 = vmatpush3.msra.mxu1 %v395_v58 }
 0x119   :  { %942 = vmatprep.subr.mxu1 %v394_v59 }
 0x11a   :  { %943 = vmatpush3.msra.mxu1 %v394_v59 }
 0x11b   :  { %944 = vmatprep.subr.mxu1 %v393_v60 }
 0x11c   :  { %945 = vmatpush3.msra.mxu1 %v393_v60 }
 0x11d   :  { %946 = vmatprep.subr.mxu1 %v392_v61 }
 0x11e   :  { %947 = vmatpush3.msra.mxu1 %v392_v61 }
 0x11f   :  { %948 = vmatprep.subr.mxu1 %v391_v62 }
 0x120   :  { %949 = vmatpush3.msra.mxu1 %v391_v62 }
 0x121   :  { %950 = vmatprep.subr.mxu1 %v390_v63 }
 0x122   :  { %951 = vmatpush3.msra.mxu1 %v390_v63 }
 0x123   :  { %952 = vmatprep.subr.mxu1 %v389_v0 }
 0x124   :  { %953 = vmatpush3.msra.mxu1 %v389_v0 }
 0x125   :  { %954 = vmatprep.subr.mxu1 %v388_v16 }
 0x126   :  { %955 = vmatpush3.msra.mxu1 %v388_v16 }
 0x127   :  { %956 = vmatprep.subr.mxu1 %v387_v17 }
 0x128   :  { %957 = vmatpush3.msra.mxu1 %v387_v17  ;;  %v569_v17 = vlaneseq }
 0x129   :  { %958 = vmatprep.subr.mxu1 %v386_v18 }
 0x12a   :  { %959 = vmatpush3.msra.mxu1 %v386_v18 }
 0x12b   :  { %960 = vmatprep.subr.mxu1 %v385_v19 }
 0x12c   :  { %961 = vmatpush3.msra.mxu1 %v385_v19 }
 0x1cd   :  { %v894_v2 = vpop.f32.mrf.mxu1 }
 0x1ce   :  { %v268_v3 = vadd.f32 %v894_v2, %v759_v1 }
 0x1cf   :  { %v262_v4 = vpop.f32.mrf.mxu1 }
 0x1d0   :  { %v761_v5 = vmul.f32 -1.442695, %v268_v3  ;;  %v263_v6 = vadd.f32 %v759_v1, %v262_v4 }
 0x1d2   :  { %1018 = vpow2.f32 %v761_v5  ;;  %v760_v7 = vmul.f32 -1.442695, %v263_v6 }
 0x1d4   :  { %1020 = vpow2.f32 %v760_v7 }
 0x1df   :  { %v1019_v8 = vpop.eup %1018 }
 0x1e0   :  { %v278_v9 = vadd.f32 1.0, %v1019_v8 }
 0x1e1   :  { %v1021_v10 = vpop.eup %1020 }
 0x1e2   :  { %v277_v11 = vadd.f32 1.0, %v1021_v10  ;;  %1022 = vrcp.f32 %v278_v9 }
 0x1e4   :  { %1024 = vrcp.f32 %v277_v11 }
 0x1ef   :  { %v1023_v12 = vpop.eup %1022 }
 0x1f0   :  { %v284_v15 = vmul.f32 %v1023_v12, %v268_v3 }
 0x1f1   :  { %v1025_v13 = vpop.eup %1024 }
 0x1f2   :  { %v283_v14 = vmul.f32 %v1025_v13, %v263_v6 }
 0x1f4   :  { %927 = vmatprep.mubr.f32.mxu0 %v283_v14 }
 0x1f5   :  { %928 = vmatmul.mubr.f32.vlgmr.msra.gmra.mxu0 %v284_v15 }
 0x1f6   :  { %966 = vmatpush3.msk.msra.mxu0 %vm488_vm1, %v480_v27 }
 0x1f7   :  { %970 = vmatprep.subr.mxu0 %v657_v28 }
 0x2b5   :  { %v929_v21 = vpop.f32.mrf.mxu0 }
 0x2b6   :  { %v1339_v22 = vadd.f32 %v929_v21, %v762_v20  ;;  %v570_v21 = vand.u32 127, %v569_v17 }
 0x2b7   :  { %v374_v23 = vpop.f32.mrf.mxu0 }
 0x2b8   :  { %v1341_v24 = vadd.f32 %v762_v20, %v374_v23  ;;  %v384_v26 = vmul.f32 %v1339_v22, %v1339_v22  ;;  %v600_v51 = vand.u32 2147483647, %v1339_v22  ;;  %v767_v58 = vmul.f32 -1.442695, %v1339_v22 }
 0x2b9   :  { %v594_v18 = vmax.f32 %v1339_v22, 0.0  ;;  %vm596_vm6 = vcmp.ne.f32.partialorder %v1339_v22, %v1339_v22  ;;  %vm572_vm7 = vcmp.ge.s32.totalorder %v570_v21, 67  ;;  %vm573_vm8 = vcmp.lt.s32.totalorder %v570_v21, 70 }
 0x2ba   :  { %v383_v25 = vmul.f32 %v1341_v24, %v1341_v24  ;;  %v599_v50 = vand.u32 2147483647, %v1341_v24  ;;  %v602_v53 = vsub.f32 0.0, %v600_v51  ;;  %v766_v59 = vmul.f32 -1.442695, %v1341_v24  ;;  %vm574_vm12 = vmand %vm572_vm7, %vm573_vm8 }
 0x2bb   :  { %v593_v16 = vmax.f32 %v1341_v24, 0.0  ;;  %vm595_vm5 = vcmp.ne.f32.partialorder %v1341_v24, %v1341_v24  ;;  %vm576_vm9 = vcmp.ge.s32.totalorder %v570_v21, 64  ;;  %vm577_vm10 = vcmp.lt.s32.totalorder %v570_v21, 67 }
 0x2bc   :  { %962 = vmatprep.mubr.f32.mxu1 %v383_v25  ;;  %v601_v52 = vsub.f32 0.0, %v599_v50  ;;  %v605_v55 = vmul.f32 1.442695, %v602_v53  ;;  %vm571_vm11 = vcmp.eq.s32.totalorder %v570_v21, 63  ;;  %vm578_vm13 = vmand %vm576_vm9, %vm577_vm10  ;;  %vm635_vm15 = vcmp.eq.s32.totalorder %v570_v21, 70 }
 0x2bd   :  { %963 = vmatmul.mubr.f32.vlgmr.msra.gmra.mxu1 %v384_v26  ;;  %vm575_vm14 = vmor %vm571_vm11, %vm574_vm12 }
 0x2be   :  { %v603_v54 = vmul.f32 1.442695, %v601_v52 }
 0x37d   :  { %v964_v29 = vpop.f32.mrf.mxu1 }
 0x37e   :  { %v477_v30 = vmax.f32 %v964_v29, 1e-24 }
 0x37f   :  { %v467_v31 = vpop.f32.mrf.mxu1 }
 0x380   :  { %v476_v32 = vmax.f32 %v467_v31, 1e-24 }
 0x382   :  { %1026 = vrsqrt.f32 %v476_v32 }
 0x383   :  { %1028 = vrsqrt.f32 %v477_v30 }
 0x384   :  { %1030 = vpow2.f32 %v603_v54 }
 0x385   :  { %1032 = vpow2.f32 %v605_v55 }
 0x386   :  { %1034 = vpow2.f32 %v767_v58 }
 0x387   :  { %1036 = vpow2.f32 %v766_v59 }
 0x38f   :  { %v1027_v33 = vpop.eup %1026 }
 0x390   :  { %v1029_v34 = vpop.eup %1028  ;;  %967 = vmatprep.mubr.msk.f32.mxu0 %vm481_vm2, %v1027_v33 }
 0x391   :  { %968 = vmatmul.mubr.msk.f32.vlgmr.msra.gmra.mxu0 %vm481_vm2, %v1029_v34  ;;  %v1031_v56 = vpop.eup %1030 }
 0x392   :  { %971 = vmatpush3.msra.mxu0 %v657_v28  ;;  %v1033_v57 = vpop.eup %1032  ;;  %v607_v60 = vadd.f32 1.0, %v1031_v56  ;;  %v610_v62 = vmul.f32 -0.5, %v1031_v56  ;;  %v613_v6 = vand.u32 2147483647, %v1031_v56 }
 0x393   :  { %972 = vmatprep.subr.mxu0 %v656_v35  ;;  %v616_v61 = vadd.f32 1.0, %v1033_v57  ;;  %v1035_v63 = vpop.eup %1034  ;;  %v619_v0 = vmul.f32 -0.5, %v1033_v57  ;;  %v622_v7 = vand.u32 2147483647, %v1033_v57 }
 0x394   :  { %973 = vmatpush3.msra.mxu0 %v656_v35  ;;  %1038 = vlog2.f32 %v607_v60  ;;  %v1037_v1 = vpop.eup %1036  ;;  %v611_v4 = vadd.f32 1.0, %v610_v62  ;;  %v586_v10 = vadd.f32 1.0, %v1035_v63  ;;  %vm614_vm3 = vcmp.lt.f32.partialorder %v613_v6, 0.0004427343 }
 0x395   :  { %974 = vmatprep.subr.mxu0 %v655_v36  ;;  %1040 = vlog2.f32 %v616_v61  ;;  %v620_v5 = vadd.f32 1.0, %v619_v0  ;;  %v585_v8 = vadd.f32 1.0, %v1037_v1  ;;  %vm623_vm4 = vcmp.lt.f32.partialorder %v622_v7, 0.0004427343 }
 0x396   :  { %975 = vmatpush3.msra.mxu0 %v655_v36  ;;  %v612_v12 = vmul.f32 %v1031_v56, %v611_v4 }
 0x397   :  { %976 = vmatprep.subr.mxu0 %v654_v37  ;;  %v621_v13 = vmul.f32 %v1033_v57, %v620_v5  ;;  %1042 = vrcp.f32 %v585_v8 }
 0x398   :  { %977 = vmatpush3.msra.mxu0 %v654_v37  ;;  %1044 = vrcp.f32 %v586_v10 }
 0x399   :  { %978 = vmatprep.subr.mxu0 %v653_v38 }
 0x39a   :  { %979 = vmatpush3.msra.mxu0 %v653_v38 }
 0x39b   :  { %980 = vmatprep.subr.mxu0 %v652_v39 }
 0x39c   :  { %981 = vmatpush3.msra.mxu0 %v652_v39  ;;  %v636_v39 = vsel %vm635_vm15, %v1341_v24, 0.0 }
 0x39d   :  { %982 = vmatprep.subr.mxu0 %v651_v40 }
 0x39e   :  { %983 = vmatpush3.msra.mxu0 %v651_v40  ;;  %v637_v40 = vsel %vm635_vm15, %v1339_v22, 0.0 }
 0x39f   :  { %984 = vmatprep.subr.mxu0 %v650_v41 }
 0x3a0   :  { %985 = vmatpush3.msra.mxu0 %v650_v41 }
 0x3a1   :  { %986 = vmatprep.subr.mxu0 %v649_v42  ;;  %v1039_v2 = vpop.eup %1038 }
 0x3a2   :  { %987 = vmatpush3.msra.mxu0 %v649_v42  ;;  %v1041_v3 = vpop.eup %1040  ;;  %v609_v9 = vmul.f32 0.6931472, %v1039_v2 }
 0x3a3   :  { %988 = vmatprep.subr.mxu0 %v648_v43  ;;  %v618_v11 = vmul.f32 0.6931472, %v1041_v3 }
 0x3a4   :  { %989 = vmatpush3.msra.mxu0 %v648_v43  ;;  %v615_v14 = vsel %vm614_vm3, %v612_v12, %v609_v9  ;;  %v1043_v28 = vpop.eup %1042 }
 0x3a5   :  { %990 = vmatprep.subr.mxu0 %v647_v44  ;;  %v624_v15 = vsel %vm623_vm4, %v621_v13, %v618_v11  ;;  %v625_v19 = vadd.f32 %v615_v14, %v593_v16  ;;  %v1045_v29 = vpop.eup %1044  ;;  %v591_v32 = vsel %vm575_vm14, %v1043_v28, 0.0 }
 0x3a6   :  { %991 = vmatpush3.msra.mxu0 %v647_v44  ;;  %v626_v20 = vadd.f32 %v624_v15, %v594_v18  ;;  %v592_v33 = vsel %vm575_vm14, %v1045_v29, 0.0 }
 0x3a7   :  { %992 = vmatprep.subr.mxu0 %v646_v45  ;;  %v627_v23 = vsel %vm595_vm5, %v1341_v24, %v625_v19 }
 0x3a8   :  { %993 = vmatpush3.msra.mxu0 %v646_v45  ;;  %v628_v25 = vsel %vm596_vm6, %v1339_v22, %v626_v20  ;;  %v629_v26 = vmul.f32 0.1, %v627_v23 }
 0x3a9   :  { %994 = vmatprep.subr.mxu0 %v645_v46  ;;  %v630_v27 = vmul.f32 0.1, %v628_v25 }
 0x3aa   :  { %995 = vmatpush3.msra.mxu0 %v645_v46  ;;  %v631_v30 = vsel %vm578_vm13, %v629_v26, 0.0 }
 0x3ab   :  { %996 = vmatprep.subr.mxu0 %v644_v47  ;;  %v632_v31 = vsel %vm578_vm13, %v630_v27, 0.0  ;;  %v633_v34 = vadd.f32 %v631_v30, %v591_v32 }
 0x3ac   :  { %997 = vmatpush3.msra.mxu0 %v644_v47  ;;  %v634_v36 = vadd.f32 %v632_v31, %v592_v33 }
 0x3ad   :  { %998 = vmatprep.subr.mxu0 %v643_v48  ;;  %v638_v42 = vadd.f32 %v636_v39, %v633_v34 }
 0x3ae   :  { %999 = vmatpush3.msra.mxu0 %v643_v48  ;;  %v639_v43 = vadd.f32 %v637_v40, %v634_v36 }
 0x3af   :  { %1000 = vmatprep.subr.mxu0 %v642_v49 }
 0x3b0   :  { %1001 = vmatpush3.msra.mxu0 %v642_v49 }
 0x451   :  { %v969_v35 = vpop.f32.mrf.mxu0 }
 0x452   :  { %v568_v37 = vmul.f32 %v969_v35, %v1339_v22 }
 0x453   :  { %v558_v38 = vpop.f32.mrf.mxu0 }
 0x454   :  { %v567_v41 = vmul.f32 %v558_v38, %v1341_v24  ;;  %v641_v45 = vadd.f32 %v639_v43, %v568_v37 }
 0x456   :  { %v640_v44 = vadd.f32 %v638_v42, %v567_v41 }
 0x458   :  { %1002 = vmatprep.mubr.f32.mxu0 %v640_v44 }
 0x459   :  { %1003 = vmatmul.mubr.f32.vlgmr.msra.gmra.mxu0 %v641_v45 }
 0x519   :  { %v1004_v46 = vpop.f32.mrf.mxu0 }
 0x51a   :  { %735 = vst.msk [vmem:[#allocation7 + $0x8] sm:$0xff] %vm733_vm0, %v1004_v46 }
 0x51b   :  { %v724_v47 = vpop.f32.mrf.mxu0 }
 0x51c   :  { %734 = vst.msk [vmem:[#allocation7] sm:$0xff] %vm733_vm0, %v724_v47 }
 0x51d   :  { %1097 = shalt.err (!%p1094_p0)
}
 0x51e   :  { %747 = dma.vmem_to_hbm [thread:$0]  %s742_s20, 256, %s1430_s10, [#allocation4], %s1113_s16, %s1113_s16, %s1114_s17  }
 0x51f   :  { %1110 = dma.done.wait [#allocation4], 256  }
 0x520   :  { %1111 = vsyncadd [#allocation4], 4294967040 }
 0x521   :  { %751 = vsyncpa [#allocation3], 1 }
 0x522   :  { %752 = vsyncpa [#allocation6], 1 }
 0x523   :  { %753 = vsyncpa [#allocation4], 1 }

</bundles_post_ra>
